<compile_context>
chip_gen: v7x
topology: tpu7x:2x2x1
jax: 0.10.0
libtpu: 0.0.40
codegen_flags: <defaults>
</compile_context>

<pallas_src>
import functools

import jax
import jax.numpy as jnp
from jax.experimental import pallas as pl
from jax.experimental.pallas import tpu as pltpu

_MIB = 1024 * 1024


def _round_up(n, m):
    return (n + m - 1) // m * m


def _device_kind():
    try:
        return jax.devices()[0].device_kind.lower()
    except Exception:
        return ""


def _is_v7():
    return "v7" in _device_kind()


def _sublane_multiple(dtype):
    return {4: 8, 2: 16, 1: 32}.get(jnp.dtype(dtype).itemsize, 8)


# --------------------------------------------------------------------------
# Kernels
# --------------------------------------------------------------------------
def _resblock_kernel(x_ref, wt_ref, b_ref, o_ref):
    """out = x + SiLU(x @ W^T + b) for one (TM, H) row tile.

    x_ref : (TM, H) activations (input dtype)
    wt_ref: (H, H)  W^T in [K, N] layout, bf16, VMEM-resident across row tiles
    b_ref : (1, H)  bias, f32
    """
    x = x_ref[...]
    h = jnp.dot(x.astype(jnp.bfloat16), wt_ref[...],
                preferred_element_type=jnp.float32)
    h = h + b_ref[...]                                  # (1, H) broadcasts
    silu = h * jax.nn.sigmoid(h)                        # f32 epilogue
    o_ref[...] = (x.astype(jnp.float32) + silu).astype(o_ref.dtype)


def _resblock_col_kernel(x_ref, xcol_ref, wt_ref, b_ref, o_ref):
    """Column-tiled variant: one (TM, TN) output tile.

    x_ref   : (TM, H)  full-width row tile (matmul LHS)
    xcol_ref: (TM, TN) the same rows, restricted to this column slab (residual)
    wt_ref  : (H, TN)  column slab of W^T, bf16, resident across row tiles
    b_ref   : (1, TN)  bias slab, f32
    """
    h = jnp.dot(x_ref[...].astype(jnp.bfloat16), wt_ref[...],
                preferred_element_type=jnp.float32)
    h = h + b_ref[...]
    silu = h * jax.nn.sigmoid(h)
    o_ref[...] = (xcol_ref[...].astype(jnp.float32) + silu).astype(o_ref.dtype)


# --------------------------------------------------------------------------
# Wrapper
# --------------------------------------------------------------------------
def resblock_forward(x, weight, bias, *, tm_target=None,
                     max_resident_weight_bytes=None):
    """Medusa ResBlock forward: x + SiLU(x @ weight.T + bias).

    x:      (..., hidden) activations (f32 or bf16).
    weight: (hidden, hidden), PyTorch nn.Linear (out, in) layout.
    bias:   (hidden,).
    """
    orig_shape = x.shape
    hidden = orig_shape[-1]
    x2d = x.reshape(-1, hidden)
    rows = x2d.shape[0]

    itemsize = jnp.dtype(x.dtype).itemsize
    sub = _sublane_multiple(x.dtype)

    v7 = _is_v7()
    if tm_target is None:
        # v5e/v6e: 128 MiB VMEM -> bigger row tiles amortize per-step overhead
        # and feed the MXU longer M runs.  v7x: 64 MiB -> keep 256.
        tm_target = 256 if v7 else 512
    if max_resident_weight_bytes is None:
        max_resident_weight_bytes = (36 if v7 else 80) * _MIB

    # ---- row / lane tiling (pad-free fast path when already aligned) ------
    hp = _round_up(hidden, 128)
    need_hpad = hp != hidden

    if rows >= tm_target:
        tm = _round_up(tm_target, sub)
        rp = rows                      # ragged last tile -> masked block store
        need_rpad = False
    else:
        tm = _round_up(rows, sub)      # single row tile covering everything
        rp = tm
        need_rpad = rp != rows
    n_row_tiles = pl.cdiv(rp, tm)

    # ---- parameters: one-time W^T + bf16 cast (fused HBM copy) ------------
    wt = weight.T.astype(jnp.bfloat16)                  # [K, N] for the MXU
    b = bias.astype(jnp.float32).reshape(1, hidden)
    if need_hpad:
        wt = jnp.zeros((hp, hp), jnp.bfloat16).at[:hidden, :hidden].set(wt)
        b = jnp.zeros((1, hp), jnp.float32).at[:, :hidden].set(b)

    if need_hpad or need_rpad:
        # Zero-pad: padded x columns / W^T rows+cols / bias lanes are zero, so
        # padded output lanes are exactly zero and safe to slice away.
        x_in = jnp.zeros((rp, hp), x.dtype).at[:rows, :hidden].set(x2d)
    else:
        x_in = x2d                     # no wrapper-side HBM copy (fast path)

    # ---- weight residency: full weight vs. column slabs --------------------
    weight_bytes = hp * hp * 2
    if weight_bytes > max_resident_weight_bytes:
        tn_options = [t for t in range(128, hp + 1, 128) if hp % t == 0]
        fitting = [t for t in tn_options if hp * t * 2 <= max_resident_weight_bytes]
        tn = max(fitting) if fitting else min(tn_options)
        n_col_tiles = hp // tn
    else:
        tn = hp
        n_col_tiles = 1

    # ---- VMEM budget (single-counted), never the full physical VMEM --------
    est = (hp * tn * 2                                   # weight (slab), 1-buffered
           + tn * 4                                      # bias, 1-buffered
           + 2 * tm * hp * itemsize                      # x full-width tile, 2-buffered
           + 2 * tm * tn * itemsize                      # out tile, 2-buffered
           + (2 * tm * tn * itemsize if n_col_tiles > 1 else 0))  # residual x slab
    hw_cap = (56 if v7 else 100) * _MIB
    vmem_limit = int(min(hw_cap, max(16 * _MIB, est + est // 8 + 2 * _MIB)))

    def _run(single_buffer_consts):
        pm = ({"pipeline_mode": pl.Buffered(1)} if single_buffer_consts else {})
        if n_col_tiles == 1:
            grid = (n_row_tiles,)
            in_specs = [
                pl.BlockSpec((tm, hp), lambda i: (i, 0)),          # x row tile
                pl.BlockSpec((hp, hp), lambda i: (0, 0), **pm),    # W^T, resident
                pl.BlockSpec((1, hp), lambda i: (0, 0), **pm),     # bias, resident
            ]
            out_spec = pl.BlockSpec((tm, hp), lambda i: (i, 0))
            kernel = _resblock_kernel
            operands = (x_in, wt, b)
            dims = ("parallel",)
        else:
            # Column slabs outermost so each (H, TN) weight slab stays
            # VMEM-resident across all row tiles.
            grid = (n_col_tiles, n_row_tiles)
            in_specs = [
                pl.BlockSpec((tm, hp), lambda j, i: (i, 0)),        # x (matmul)
                pl.BlockSpec((tm, tn), lambda j, i: (i, j)),        # x (residual)
                pl.BlockSpec((hp, tn), lambda j, i: (0, j), **pm),  # W^T slab
                pl.BlockSpec((1, tn), lambda j, i: (0, j), **pm),   # bias slab
            ]
            out_spec = pl.BlockSpec((tm, tn), lambda j, i: (i, j))
            kernel = _resblock_col_kernel
            operands = (x_in, x_in, wt, b)
            dims = ("parallel", "parallel")

        return pl.pallas_call(
            kernel,
            out_shape=jax.ShapeDtypeStruct((rp, hp), x.dtype),
            grid_spec=pltpu.PrefetchScalarGridSpec(
                num_scalar_prefetch=0,
                grid=grid,
                in_specs=in_specs,
                out_specs=out_spec,
            ),
            compiler_params=pltpu.CompilerParams(
                dimension_semantics=dims,
                vmem_limit_bytes=vmem_limit,
            ),
        )(*operands)

    try:
        out = _run(True)
    except Exception:
        # pl.Buffered(1) not supported by this JAX build -> default buffering.
        out = _run(False)

    if need_hpad or need_rpad:
        out = out[:rows, :hidden]
    return out.reshape(orig_shape)


# --------------------------------------------------------------------------
# Self-test
# --------------------------------------------------------------------------
if __name__ == "__main__":
    key = jax.random.PRNGKey(0)
    k_x, k_b, k_w, k_x2, k_w2, k_b2 = jax.random.split(key, 6)

    def ref_fn(x, w, b):
        h = x @ w.T + b
        return x + h * jax.nn.sigmoid(h)

    # --- 1) Module-default config (zero weight), small hidden -------------
    batch, seq, hidden = 2, 8, 32
    x = jax.random.normal(k_x, (batch, seq, hidden), dtype=jnp.float32)
    weight = jnp.zeros((hidden, hidden), dtype=jnp.float32)          # zero-init
    bound = 1.0 / (hidden ** 0.5)
    bias = jax.random.uniform(k_b, (hidden,), minval=-bound, maxval=bound,
                              dtype=jnp.float32)

    out = jax.block_until_ready(resblock_forward(x, weight, bias))
    assert jnp.allclose(out, ref_fn(x, weight, bias), atol=1e-5, rtol=1e-5), \
        "mismatch (zero W)"

    # --- 2) Nonzero weight (exercises the bf16 MXU path) ------------------
    w2 = 0.02 * jax.random.normal(k_w, (hidden, hidden), dtype=jnp.float32)
    out2 = jax.block_until_ready(resblock_forward(x, w2, bias))
    assert jnp.allclose(out2, ref_fn(x, w2, bias), atol=5e-2, rtol=5e-2), \
        "mismatch (rand W)"

    # --- 3) Pad-free fast path with multiple + ragged row tiles -----------
    hidden3, rows3 = 256, 40                     # 128-multiple hidden, 8-mult rows
    x3 = jax.random.normal(k_x2, (rows3, hidden3), dtype=jnp.float32)
    w3 = 0.02 * jax.random.normal(k_w2, (hidden3, hidden3), dtype=jnp.float32)
    b3 = jax.random.uniform(k_b2, (hidden3,), minval=-0.1, maxval=0.1,
                            dtype=jnp.float32)
    out3 = jax.block_until_ready(resblock_forward(x3, w3, b3, tm_target=16))
    assert jnp.allclose(out3, ref_fn(x3, w3, b3), atol=5e-2, rtol=5e-2), \
        "mismatch (ragged row tiles)"

    # --- 4) Column-tiled weight fallback (forced small weight budget) -----
    out4 = jax.block_until_ready(
        resblock_forward(x3, w3, b3, tm_target=16,
                         max_resident_weight_bytes=hidden3 * 128 * 2))
    assert jnp.allclose(out4, ref_fn(x3, w3, b3), atol=5e-2, rtol=5e-2), \
        "mismatch (column-tiled weight)"

    print("KERNEL_OK")
</pallas_src>

<mosaic_0001>
module attributes {stable_mosaic.version = 11 : i64} {
  func.func @_resblock_kernel(%arg0: i32, %arg1: memref<16x128xf32, #tpu.memory_space<vmem>>, %arg2: memref<128x128xbf16, #tpu.memory_space<vmem>>, %arg3: memref<1x128xf32, #tpu.memory_space<vmem>>, %arg4: memref<16x128xf32, #tpu.memory_space<vmem>>) attributes {dimension_semantics = [#tpu.dimension_semantics<parallel>], iteration_bounds = array<i64: 1>, scalar_prefetch = 0 : i64, scratch_operands = 0 : i64, tpu.core_type = #tpu.core_type<tc>, window_params = [{transform_indices = @transform_0, window_bounds = array<i64: 16, 128>}, {pipeline_mode = #tpu.pipeline_mode<synchronous>, transform_indices = @transform_1, window_bounds = array<i64: 128, 128>}, {pipeline_mode = #tpu.pipeline_mode<synchronous>, transform_indices = @transform_2, window_bounds = array<i64: 1, 128>}, {transform_indices = @transform_3, window_bounds = array<i64: 16, 128>}]} {
    %c0 = arith.constant 0 : index
    %c0_0 = arith.constant 0 : index
    %0 = vector.load %arg1[%c0, %c0_0] : memref<16x128xf32, #tpu.memory_space<vmem>>, vector<16x128xf32>
    %1 = arith.truncf %0 : vector<16x128xf32> to vector<16x128xbf16>
    %c0_1 = arith.constant 0 : index
    %c0_2 = arith.constant 0 : index
    %2 = vector.load %arg2[%c0_1, %c0_2] : memref<128x128xbf16, #tpu.memory_space<vmem>>, vector<128x128xbf16>
    %cst = arith.constant dense<0.000000e+00> : vector<16x128xf32>
    %3 = tpu.matmul %1, %2, %cst {dimension_numbers = #tpu.dot_dimension_numbers<[1], [0], [0], [1], [0, 0, 1, 1], [], []>} : vector<16x128xbf16>, vector<128x128xbf16>, vector<16x128xf32> -> vector<16x128xf32>
    %c0_3 = arith.constant 0 : index
    %c0_4 = arith.constant 0 : index
    %4 = vector.load %arg3[%c0_3, %c0_4] : memref<1x128xf32, #tpu.memory_space<vmem>>, vector<1x128xf32>
    %5 = vector.broadcast %4 : vector<1x128xf32> to vector<16x128xf32>
    %6 = arith.addf %3, %5 : vector<16x128xf32>
    %7 = arith.negf %6 : vector<16x128xf32>
    %8 = math.exp %7 : vector<16x128xf32>
    %cst_5 = arith.constant 1.000000e+00 : f32
    %9 = vector.broadcast %cst_5 : f32 to vector<16x128xf32>
    %10 = arith.addf %9, %8 : vector<16x128xf32>
    %11 = arith.divf %9, %10 : vector<16x128xf32>
    %12 = arith.mulf %6, %11 : vector<16x128xf32>
    %13 = arith.addf %0, %12 : vector<16x128xf32>
    %c0_6 = arith.constant 0 : index
    %c0_7 = arith.constant 0 : index
    %14 = vector.load %arg4[%c0_6, %c0_7] : memref<16x128xf32, #tpu.memory_space<vmem>>, vector<16x128xf32>
    tpu.vector_store %arg4[%c0_6, %c0_7], %13 {strides = array<i32>} : memref<16x128xf32, #tpu.memory_space<vmem>>, vector<16x128xf32>,
    return
  }
  func.func @transform_0(%arg0: i32) -> (i32, i32) {
    %c0_i32 = arith.constant 0 : i32
    %c0_i32_0 = arith.constant 0 : i32
    return %arg0, %c0_i32 : i32, i32
  }
  func.func @transform_1(%arg0: i32) -> (i32, i32) {
    %c0_i32 = arith.constant 0 : i32
    %c0_i32_0 = arith.constant 0 : i32
    %c0_i32_1 = arith.constant 0 : i32
    return %c0_i32, %c0_i32_0 : i32, i32
  }
  func.func @transform_2(%arg0: i32) -> (i32, i32) {
    %c0_i32 = arith.constant 0 : i32
    %c0_i32_0 = arith.constant 0 : i32
    %c0_i32_1 = arith.constant 0 : i32
    return %c0_i32, %c0_i32_0 : i32, i32
  }
  func.func @transform_3(%arg0: i32) -> (i32, i32) {
    %c0_i32 = arith.constant 0 : i32
    %c0_i32_0 = arith.constant 0 : i32
    return %arg0, %c0_i32 : i32, i32
  }
}

module attributes {stable_mosaic.version = 11 : i64} {
  func.func @_resblock_kernel(%arg0: i32, %arg1: memref<16x128xf32, #tpu.memory_space<vmem>>, %arg2: memref<128x128xbf16, #tpu.memory_space<vmem>>, %arg3: memref<1x128xf32, #tpu.memory_space<vmem>>, %arg4: memref<16x128xf32, #tpu.memory_space<vmem>>) attributes {dimension_semantics = [#tpu.dimension_semantics<parallel>], iteration_bounds = array<i64: 1>, scalar_prefetch = 0 : i64, scratch_operands = 0 : i64, tpu.core_type = #tpu.core_type<tc>, window_params = [{transform_indices = @transform_0, window_bounds = array<i64: 16, 128>}, {pipeline_mode = #tpu.pipeline_mode<synchronous>, transform_indices = @transform_1, window_bounds = array<i64: 128, 128>}, {pipeline_mode = #tpu.pipeline_mode<synchronous>, transform_indices = @transform_2, window_bounds = array<i64: 1, 128>}, {transform_indices = @transform_3, window_bounds = array<i64: 16, 128>}]} {
    %c0 = arith.constant 0 : index
    %c0_0 = arith.constant 0 : index
    %0 = vector.load %arg1[%c0, %c0_0] : memref<16x128xf32, #tpu.memory_space<vmem>>, vector<16x128xf32>
    %1 = arith.truncf %0 : vector<16x128xf32> to vector<16x128xbf16>
    %c0_1 = arith.constant 0 : index
    %c0_2 = arith.constant 0 : index
    %2 = vector.load %arg2[%c0_1, %c0_2] : memref<128x128xbf16, #tpu.memory_space<vmem>>, vector<128x128xbf16>
    %cst = arith.constant dense<0.000000e+00> : vector<16x128xf32>
    %3 = tpu.matmul %1, %2, %cst {dimension_numbers = #tpu.dot_dimension_numbers<[1], [0], [0], [1], [0, 0, 1, 1], [], []>} : vector<16x128xbf16>, vector<128x128xbf16>, vector<16x128xf32> -> vector<16x128xf32>
    %c0_3 = arith.constant 0 : index
    %c0_4 = arith.constant 0 : index
    %4 = vector.load %arg3[%c0_3, %c0_4] : memref<1x128xf32, #tpu.memory_space<vmem>>, vector<1x128xf32>
    %5 = vector.broadcast %4 : vector<1x128xf32> to vector<16x128xf32>
    %6 = arith.addf %3, %5 : vector<16x128xf32>
    %7 = arith.negf %6 : vector<16x128xf32>
    %8 = math.exp %7 : vector<16x128xf32>
    %cst_5 = arith.constant 1.000000e+00 : f32
    %9 = vector.broadcast %cst_5 : f32 to vector<16x128xf32>
    %10 = arith.addf %9, %8 : vector<16x128xf32>
    %11 = arith.divf %9, %10 : vector<16x128xf32>
    %12 = arith.mulf %6, %11 : vector<16x128xf32>
    %13 = arith.addf %0, %12 : vector<16x128xf32>
    %c0_6 = arith.constant 0 : index
    %c0_7 = arith.constant 0 : index
    %14 = vector.load %arg4[%c0_6, %c0_7] : memref<16x128xf32, #tpu.memory_space<vmem>>, vector<16x128xf32>
    tpu.vector_store %arg4[%c0_6, %c0_7], %13 {strides = array<i32>} : memref<16x128xf32, #tpu.memory_space<vmem>>, vector<16x128xf32>,
    return
  }
  func.func @transform_0(%arg0: i32) -> (i32, i32) {
    %c0_i32 = arith.constant 0 : i32
    %c0_i32_0 = arith.constant 0 : i32
    return %arg0, %c0_i32 : i32, i32
  }
  func.func @transform_1(%arg0: i32) -> (i32, i32) {
    %c0_i32 = arith.constant 0 : i32
    %c0_i32_0 = arith.constant 0 : i32
    %c0_i32_1 = arith.constant 0 : i32
    return %c0_i32, %c0_i32_0 : i32, i32
  }
  func.func @transform_2(%arg0: i32) -> (i32, i32) {
    %c0_i32 = arith.constant 0 : i32
    %c0_i32_0 = arith.constant 0 : i32
    %c0_i32_1 = arith.constant 0 : i32
    return %c0_i32, %c0_i32_0 : i32, i32
  }
  func.func @transform_3(%arg0: i32) -> (i32, i32) {
    %c0_i32 = arith.constant 0 : i32
    %c0_i32_0 = arith.constant 0 : i32
    return %arg0, %c0_i32 : i32, i32
  }
}

</mosaic_0001>

<bundles_post_ra>
// kernel: tpu_custom_call.1
= control target key start
LH: loop header
LB: loop body
LE: loop exit
PB: predicated region body
PF: predicated region fallthrough
CT: control target
= control target key end

     0   :  { %8 = vsyncpa [#allocation3], 0  ;;  %s406_s0 = inlined_call_operand.hbm [shape: f32[16,128], index: 0, kind: input, shape index: {}]   ;;  %s407_s1 = inlined_call_operand.hbm [shape: bf16[128,128], index: 1, kind: input, shape index: {}]   ;;  %s408_s2 = inlined_call_operand.vmem [shape: f32[1,128], index: 2, kind: input, shape index: {}]   ;;  %s409_s3 = inlined_call_operand.hbm [shape: f32[16,128], index: 3, kind: output, shape index: {}]  }
   0x1   :  { %9 = vsyncpa [#allocation6], 0 }
   0x2   :  { %10 = vsyncpa [#allocation4], 0  ;;  %s332_s12 = smov [#allocation2]   ;;  %s260_s16 = scalar_lea.hbm %s406_s0, 256 }
   0x3   :  { %s16_s13 = sshll.u32 %s332_s12, 4  ;;  %p261_p0 = scmp.ne.s32.totalorder %s406_s0, %s260_s16  ;;  %s17_s13 = int_to_ptr.vmem [resolvable:$true] %s16_s13 }
   0x4   :  { %p264_p1 = scmp.lt.u32.totalorder %s260_s16, %s406_s0 }
   0x6   :  { %p266_p2 = pnand %p264_p1, %p261_p0 }
   0x8   :  { %269 = shalt.err (!%p266_p2)
}
   0x9   :  { %s270_s21 = scalar_lea.vmem %s17_s13, 256  ;;  %p275_p4 = scmp.lt.s32.totalorder %s17_s13, %s17_s13 }
   0xa   :  { %p271_p3 = scmp.ne.s32.totalorder %s17_s13, %s270_s21  ;;  %p276_p5 = scmp.lt.s32.totalorder %s270_s21, %s270_s21 }
   0xc   :  { %p277_p6 = por %p276_p5, %p275_p4 }
   0xe   :  { %p278_p7 = pnand %p277_p6, %p271_p3 }
  0x10   :  { %281 = shalt.err (!%p278_p7)
}
  0x11   :  { %s333_s22 = smov 128   ;;  %s334_s23 = smov 8  }
  0x12   :  { %22 = dma.hbm_to_vmem [thread:$0]  %s406_s0, 256, %s17_s13, [#allocation3], %s333_s22, %s333_s22, %s334_s23  }
  0x13   :  { %s335_s26 = smov [#allocation5]   ;;  %s282_s30 = scalar_lea.hbm %s407_s1, 1024 }
  0x14   :  { %s28_s27 = sshll.u32 %s335_s26, 4  ;;  %p283_p8 = scmp.ne.s32.totalorder %s407_s1, %s282_s30  ;;  %s29_s27 = int_to_ptr.vmem [resolvable:$true] %s28_s27 }
  0x15   :  { %p286_p9 = scmp.lt.u32.totalorder %s282_s30, %s407_s1 }
  0x17   :  { %p288_p10 = pnand %p286_p9, %p283_p8 }
  0x19   :  { %291 = shalt.err (!%p288_p10)
}
  0x1a   :  { %s292_s8 = scalar_lea.vmem %s29_s27, 1024  ;;  %p297_p12 = scmp.lt.s32.totalorder %s29_s27, %s29_s27 }
  0x1b   :  { %p293_p11 = scmp.ne.s32.totalorder %s29_s27, %s292_s8  ;;  %p298_p13 = scmp.lt.s32.totalorder %s292_s8, %s292_s8 }
  0x1d   :  { %p299_p0 = por %p298_p13, %p297_p12 }
  0x1f   :  { %p300_p1 = pnand %p299_p0, %p293_p11 }
  0x21   :  { %303 = shalt.err (!%p300_p1)
}
  0x22   :  { %s336_s0 = smov 64   ;;  %s337_s9 = smov 4  }
  0x23   :  { %34 = dma.hbm_to_vmem [thread:$0]  %s407_s1, 1024, %s29_s27, [#allocation6], %s336_s0, %s336_s0, %s337_s9  }
  0x24   :  { %326 = dma.done.wait [#allocation3], 256  }
  0x25   :  { %327 = vsyncadd [#allocation3], 4294967040 }
  0x26   :  { %328 = dma.done.wait [#allocation6], 1024  }
  0x27   :  { %329 = vsyncadd [#allocation6], 4294966272  ;;  %v338_v0 = vmov 0.0   ;;  %vm339_vm0 = vmmov 0   ;;  %v244_v1 = vld [vmem:[#allocation5] sm:$0xff]   ;;  %v245_v2 = vld [vmem:[#allocation5 + $0x8] sm:$0xff]  }
  0x28   :  { %215 = vmatprep.subr.bf16.mxu0 %v338_v0  ;;  %231 = vmatprep.mubr.msk.bf16.mxu0 %vm339_vm0, %v338_v0  ;;  %v246_v3 = vld [vmem:[#allocation5 + $0x10] sm:$0xff]   ;;  %v247_v4 = vld [vmem:[#allocation5 + $0x18] sm:$0xff]   ;;  %v248_v5 = vld [vmem:[#allocation5 + $0x20] sm:$0xff]  }
  0x29   :  { %216 = vmatpush3.bf16.msra.mxu0 %v244_v1  ;;  %v249_v6 = vld [vmem:[#allocation5 + $0x28] sm:$0xff]   ;;  %v250_v7 = vld [vmem:[#allocation5 + $0x30] sm:$0xff]   ;;  %v251_v8 = vld [vmem:[#allocation5 + $0x38] sm:$0xff]  }
  0x2a   :  { %217 = vmatprep.subr.bf16.mxu0 %v338_v0  ;;  %v44_v9 = vld [vmem:[#allocation2] sm:$0xff]  ;;  %v45_v10 = vld [vmem:[#allocation2 + $0x8] sm:$0xff] }
  0x2b   :  { %v46_v11 = vpack.c.bf16 %v45_v10, %v44_v9  ;;  %v195_v12 = vld [vmem:[%s408_s2] ss:$0 sm:$0xff]  ;;  %s340_s2 = smov [#allocation7]  }
  0x2c   :  { %s182_s13 = sshll.u32 %s340_s2, 4  ;;  %s183_s13 = int_to_ptr.vmem [resolvable:$true] %s182_s13 }
  0x2d   :  { %218 = vmatpush3.bf16.msra.mxu0 %v245_v2  ;;  %s304_s14 = scalar_lea.vmem %s183_s13, 256  ;;  %p309_p3 = scmp.lt.s32.totalorder %s183_s13, %s183_s13 }
  0x2e   :  { %219 = vmatprep.subr.bf16.mxu0 %v338_v0  ;;  %p305_p2 = scmp.ne.s32.totalorder %s183_s13, %s304_s14  ;;  %p310_p4 = scmp.lt.s32.totalorder %s304_s14, %s304_s14 }
  0x30   :  { %p311_p5 = por %p310_p4, %p309_p3 }
  0x31   :  { %220 = vmatpush3.bf16.msra.mxu0 %v246_v3 }
  0x32   :  { %221 = vmatprep.subr.bf16.mxu0 %v338_v0  ;;  %p312_p6 = pnand %p311_p5, %p305_p2 }
  0x35   :  { %222 = vmatpush3.bf16.msra.mxu0 %v247_v4 }
  0x36   :  { %223 = vmatprep.subr.bf16.mxu0 %v338_v0 }
  0x39   :  { %224 = vmatpush3.bf16.msra.mxu0 %v248_v5 }
  0x3a   :  { %225 = vmatprep.subr.bf16.mxu0 %v338_v0 }
  0x3d   :  { %226 = vmatpush3.bf16.msra.mxu0 %v249_v6 }
  0x3e   :  { %227 = vmatprep.subr.bf16.mxu0 %v338_v0 }
  0x41   :  { %228 = vmatpush3.bf16.msra.mxu0 %v250_v7 }
  0x42   :  { %229 = vmatprep.subr.bf16.mxu0 %v338_v0 }
  0x45   :  { %230 = vmatpush3.bf16.msra.mxu0 %v251_v8 }
  0x48   :  { %232 = vmatmul.mubr.bf16.vlgmr.msra.gmra.mrb[0].mxu0 %v46_v11 }
 0x11b   :  { %v152_v13 = vpop.f32.mrb[0].mxu0 }
 0x11c   :  { %v153_v14 = vadd.f32 %v195_v12, %v152_v13  ;;  %v233_v15 = vpop.f32.mrb[1].mxu0 }
 0x11d   :  { %v155_v16 = vpop.f32.mrb[2].mxu0 }
 0x11e   :  { %v204_v17 = vmul.f32 -1.442695, %v153_v14  ;;  %v156_v18 = vadd.f32 %v195_v12, %v155_v16  ;;  %v234_v19 = vpop.f32.mrb[3].mxu0 }
 0x120   :  { %252 = vpow2.f32 %v204_v17  ;;  %v205_v20 = vmul.f32 -1.442695, %v156_v18 }
 0x122   :  { %254 = vpow2.f32 %v205_v20 }
 0x12a   :  { %v253_v21 = vpop.eup %252 }
 0x12b   :  { %v165_v22 = vadd.f32 1.0, %v253_v21 }
 0x12c   :  { %v255_v23 = vpop.eup %254 }
 0x12d   :  { %256 = vrcp.f32 %v165_v22  ;;  %v166_v24 = vadd.f32 1.0, %v255_v23 }
 0x12f   :  { %258 = vrcp.f32 %v166_v24 }
 0x137   :  { %v257_v25 = vpop.eup %256 }
 0x138   :  { %v171_v26 = vmul.f32 %v257_v25, %v153_v14 }
 0x139   :  { %v259_v27 = vpop.eup %258 }
 0x13a   :  { %v173_v28 = vadd.f32 %v171_v26, %v44_v9  ;;  %v172_v29 = vmul.f32 %v259_v27, %v156_v18 }
 0x13c   :  { %175 = vst [vmem:[#allocation7] sm:$0xff] %v173_v28  ;;  %v174_v30 = vadd.f32 %v172_v29, %v45_v10 }
 0x13e   :  { %176 = vst [vmem:[#allocation7 + $0x8] sm:$0xff] %v174_v30 }
 0x13f   :  { %315 = shalt.err (!%p312_p6)
}
 0x140   :  { %s316_s17 = scalar_lea.hbm %s409_s3, 256 }
 0x141   :  { %p317_p7 = scmp.ne.s32.totalorder %s409_s3, %s316_s17  ;;  %p320_p8 = scmp.lt.u32.totalorder %s316_s17, %s409_s3 }
 0x143   :  { %p322_p9 = pnand %p320_p8, %p317_p7 }
 0x145   :  { %325 = shalt.err (!%p322_p9)
}
 0x146   :  { %188 = dma.vmem_to_hbm [thread:$0]  %s183_s13, 256, %s409_s3, [#allocation4], %s333_s22, %s333_s22, %s334_s23  }
 0x147   :  { %330 = dma.done.wait [#allocation4], 256  }
 0x148   :  { %331 = vsyncadd [#allocation4], 4294967040 }
 0x149   :  { %192 = vsyncpa [#allocation3], 1 }
 0x14a   :  { %193 = vsyncpa [#allocation6], 1 }
 0x14b   :  { %194 = vsyncpa [#allocation4], 1 }

// kernel: tpu_custom_call.1
= control target key start
LH: loop header
LB: loop body
LE: loop exit
PB: predicated region body
PF: predicated region fallthrough
CT: control target
= control target key end

     0   :  { %8 = vsyncpa [#allocation3], 0  ;;  %s406_s0 = inlined_call_operand.hbm [shape: f32[16,128], index: 0, kind: input, shape index: {}]   ;;  %s407_s1 = inlined_call_operand.hbm [shape: bf16[128,128], index: 1, kind: input, shape index: {}]   ;;  %s408_s2 = inlined_call_operand.vmem [shape: f32[1,128], index: 2, kind: input, shape index: {}]   ;;  %s409_s3 = inlined_call_operand.hbm [shape: f32[16,128], index: 3, kind: output, shape index: {}]  }
   0x1   :  { %9 = vsyncpa [#allocation6], 0 }
   0x2   :  { %10 = vsyncpa [#allocation4], 0  ;;  %s332_s12 = smov [#allocation2]   ;;  %s260_s16 = scalar_lea.hbm %s406_s0, 256 }
   0x3   :  { %s16_s13 = sshll.u32 %s332_s12, 4  ;;  %p261_p0 = scmp.ne.s32.totalorder %s406_s0, %s260_s16  ;;  %s17_s13 = int_to_ptr.vmem [resolvable:$true] %s16_s13 }
   0x4   :  { %p264_p1 = scmp.lt.u32.totalorder %s260_s16, %s406_s0 }
   0x6   :  { %p266_p2 = pnand %p264_p1, %p261_p0 }
   0x8   :  { %269 = shalt.err (!%p266_p2)
}
   0x9   :  { %s270_s21 = scalar_lea.vmem %s17_s13, 256  ;;  %p275_p4 = scmp.lt.s32.totalorder %s17_s13, %s17_s13 }
   0xa   :  { %p271_p3 = scmp.ne.s32.totalorder %s17_s13, %s270_s21  ;;  %p276_p5 = scmp.lt.s32.totalorder %s270_s21, %s270_s21 }
   0xc   :  { %p277_p6 = por %p276_p5, %p275_p4 }
   0xe   :  { %p278_p7 = pnand %p277_p6, %p271_p3 }
  0x10   :  { %281 = shalt.err (!%p278_p7)
}
  0x11   :  { %s333_s22 = smov 128   ;;  %s334_s23 = smov 8  }
  0x12   :  { %22 = dma.hbm_to_vmem [thread:$0]  %s406_s0, 256, %s17_s13, [#allocation3], %s333_s22, %s333_s22, %s334_s23  }
  0x13   :  { %s335_s26 = smov [#allocation5]   ;;  %s282_s30 = scalar_lea.hbm %s407_s1, 1024 }
  0x14   :  { %s28_s27 = sshll.u32 %s335_s26, 4  ;;  %p283_p8 = scmp.ne.s32.totalorder %s407_s1, %s282_s30  ;;  %s29_s27 = int_to_ptr.vmem [resolvable:$true] %s28_s27 }
  0x15   :  { %p286_p9 = scmp.lt.u32.totalorder %s282_s30, %s407_s1 }
  0x17   :  { %p288_p10 = pnand %p286_p9, %p283_p8 }
  0x19   :  { %291 = shalt.err (!%p288_p10)
}
  0x1a   :  { %s292_s8 = scalar_lea.vmem %s29_s27, 1024  ;;  %p297_p12 = scmp.lt.s32.totalorder %s29_s27, %s29_s27 }
  0x1b   :  { %p293_p11 = scmp.ne.s32.totalorder %s29_s27, %s292_s8  ;;  %p298_p13 = scmp.lt.s32.totalorder %s292_s8, %s292_s8 }
  0x1d   :  { %p299_p0 = por %p298_p13, %p297_p12 }
  0x1f   :  { %p300_p1 = pnand %p299_p0, %p293_p11 }
  0x21   :  { %303 = shalt.err (!%p300_p1)
}
  0x22   :  { %s336_s0 = smov 64   ;;  %s337_s9 = smov 4  }
  0x23   :  { %34 = dma.hbm_to_vmem [thread:$0]  %s407_s1, 1024, %s29_s27, [#allocation6], %s336_s0, %s336_s0, %s337_s9  }
  0x24   :  { %326 = dma.done.wait [#allocation3], 256  }
  0x25   :  { %327 = vsyncadd [#allocation3], 4294967040 }
  0x26   :  { %328 = dma.done.wait [#allocation6], 1024  }
  0x27   :  { %329 = vsyncadd [#allocation6], 4294966272  ;;  %v338_v0 = vmov 0.0   ;;  %vm339_vm0 = vmmov 0   ;;  %v244_v1 = vld [vmem:[#allocation5] sm:$0xff]   ;;  %v245_v2 = vld [vmem:[#allocation5 + $0x8] sm:$0xff]  }
  0x28   :  { %215 = vmatprep.subr.bf16.mxu0 %v338_v0  ;;  %231 = vmatprep.mubr.msk.bf16.mxu0 %vm339_vm0, %v338_v0  ;;  %v246_v3 = vld [vmem:[#allocation5 + $0x10] sm:$0xff]   ;;  %v247_v4 = vld [vmem:[#allocation5 + $0x18] sm:$0xff]   ;;  %v248_v5 = vld [vmem:[#allocation5 + $0x20] sm:$0xff]  }
  0x29   :  { %216 = vmatpush3.bf16.msra.mxu0 %v244_v1  ;;  %v249_v6 = vld [vmem:[#allocation5 + $0x28] sm:$0xff]   ;;  %v250_v7 = vld [vmem:[#allocation5 + $0x30] sm:$0xff]   ;;  %v251_v8 = vld [vmem:[#allocation5 + $0x38] sm:$0xff]  }
  0x2a   :  { %217 = vmatprep.subr.bf16.mxu0 %v338_v0  ;;  %v44_v9 = vld [vmem:[#allocation2] sm:$0xff]  ;;  %v45_v10 = vld [vmem:[#allocation2 + $0x8] sm:$0xff] }
  0x2b   :  { %v46_v11 = vpack.c.bf16 %v45_v10, %v44_v9  ;;  %v195_v12 = vld [vmem:[%s408_s2] ss:$0 sm:$0xff]  ;;  %s340_s2 = smov [#allocation7]  }
  0x2c   :  { %s182_s13 = sshll.u32 %s340_s2, 4  ;;  %s183_s13 = int_to_ptr.vmem [resolvable:$true] %s182_s13 }
  0x2d   :  { %218 = vmatpush3.bf16.msra.mxu0 %v245_v2  ;;  %s304_s14 = scalar_lea.vmem %s183_s13, 256  ;;  %p309_p3 = scmp.lt.s32.totalorder %s183_s13, %s183_s13 }
  0x2e   :  { %219 = vmatprep.subr.bf16.mxu0 %v338_v0  ;;  %p305_p2 = scmp.ne.s32.totalorder %s183_s13, %s304_s14  ;;  %p310_p4 = scmp.lt.s32.totalorder %s304_s14, %s304_s14 }
  0x30   :  { %p311_p5 = por %p310_p4, %p309_p3 }
  0x31   :  { %220 = vmatpush3.bf16.msra.mxu0 %v246_v3 }
  0x32   :  { %221 = vmatprep.subr.bf16.mxu0 %v338_v0  ;;  %p312_p6 = pnand %p311_p5, %p305_p2 }
  0x35   :  { %222 = vmatpush3.bf16.msra.mxu0 %v247_v4 }
  0x36   :  { %223 = vmatprep.subr.bf16.mxu0 %v338_v0 }
  0x39   :  { %224 = vmatpush3.bf16.msra.mxu0 %v248_v5 }
  0x3a   :  { %225 = vmatprep.subr.bf16.mxu0 %v338_v0 }
  0x3d   :  { %226 = vmatpush3.bf16.msra.mxu0 %v249_v6 }
  0x3e   :  { %227 = vmatprep.subr.bf16.mxu0 %v338_v0 }
  0x41   :  { %228 = vmatpush3.bf16.msra.mxu0 %v250_v7 }
  0x42   :  { %229 = vmatprep.subr.bf16.mxu0 %v338_v0 }
  0x45   :  { %230 = vmatpush3.bf16.msra.mxu0 %v251_v8 }
  0x48   :  { %232 = vmatmul.mubr.bf16.vlgmr.msra.gmra.mrb[0].mxu0 %v46_v11 }
 0x11b   :  { %v152_v13 = vpop.f32.mrb[0].mxu0 }
 0x11c   :  { %v153_v14 = vadd.f32 %v195_v12, %v152_v13  ;;  %v233_v15 = vpop.f32.mrb[1].mxu0 }
 0x11d   :  { %v155_v16 = vpop.f32.mrb[2].mxu0 }
 0x11e   :  { %v204_v17 = vmul.f32 -1.442695, %v153_v14  ;;  %v156_v18 = vadd.f32 %v195_v12, %v155_v16  ;;  %v234_v19 = vpop.f32.mrb[3].mxu0 }
 0x120   :  { %252 = vpow2.f32 %v204_v17  ;;  %v205_v20 = vmul.f32 -1.442695, %v156_v18 }
 0x122   :  { %254 = vpow2.f32 %v205_v20 }
 0x12a   :  { %v253_v21 = vpop.eup %252 }
 0x12b   :  { %v165_v22 = vadd.f32 1.0, %v253_v21 }
 0x12c   :  { %v255_v23 = vpop.eup %254 }
 0x12d   :  { %256 = vrcp.f32 %v165_v22  ;;  %v166_v24 = vadd.f32 1.0, %v255_v23 }
 0x12f   :  { %258 = vrcp.f32 %v166_v24 }
 0x137   :  { %v257_v25 = vpop.eup %256 }
 0x138   :  { %v171_v26 = vmul.f32 %v257_v25, %v153_v14 }
 0x139   :  { %v259_v27 = vpop.eup %258 }
 0x13a   :  { %v173_v28 = vadd.f32 %v171_v26, %v44_v9  ;;  %v172_v29 = vmul.f32 %v259_v27, %v156_v18 }
 0x13c   :  { %175 = vst [vmem:[#allocation7] sm:$0xff] %v173_v28  ;;  %v174_v30 = vadd.f32 %v172_v29, %v45_v10 }
 0x13e   :  { %176 = vst [vmem:[#allocation7 + $0x8] sm:$0xff] %v174_v30 }
 0x13f   :  { %315 = shalt.err (!%p312_p6)
}
 0x140   :  { %s316_s17 = scalar_lea.hbm %s409_s3, 256 }
 0x141   :  { %p317_p7 = scmp.ne.s32.totalorder %s409_s3, %s316_s17  ;;  %p320_p8 = scmp.lt.u32.totalorder %s316_s17, %s409_s3 }
 0x143   :  { %p322_p9 = pnand %p320_p8, %p317_p7 }
 0x145   :  { %325 = shalt.err (!%p322_p9)
}
 0x146   :  { %188 = dma.vmem_to_hbm [thread:$0]  %s183_s13, 256, %s409_s3, [#allocation4], %s333_s22, %s333_s22, %s334_s23  }
 0x147   :  { %330 = dma.done.wait [#allocation4], 256  }
 0x148   :  { %331 = vsyncadd [#allocation4], 4294967040 }
 0x149   :  { %192 = vsyncpa [#allocation3], 1 }
 0x14a   :  { %193 = vsyncpa [#allocation6], 1 }
 0x14b   :  { %194 = vsyncpa [#allocation4], 1 }

</bundles_post_ra>
